<compile_context>
chip_gen: v6e
topology: v6e:2x2x1
jax: 0.10.0
libtpu: 0.0.40
codegen_flags: <defaults>
</compile_context>

<pallas_src>
import functools

import jax
import jax.numpy as jnp
from jax.experimental import pallas as pl
from jax.experimental.pallas import tpu as pltpu


_FP_ALIGN = 128   # lane width: pad feature dims to a multiple of this
_N_ALIGN = 128    # pad node count so every A_hat tile is (8,128)-aligned


# ------------------------------ fused kernel --------------------------------

def _encoder_kernel(a_ref, x_ref, w_ref, b_ref, skw_ref, skb_ref, alpha_ref,
                    o_ref, acc_ref, xw_ref, *, tm):
    """grid = (layer, A_hat row tile).  Scratch persists across grid steps:
         acc_ref : (Np, FP) f32  running skip-sum  u_l  (h of each layer is
                                 accumulated into it tile-by-tile)
         xw_ref  : (Np, FP) bf16 X@W of the current layer (computed once/layer)
    """
    layer = pl.program_id(0)
    tile = pl.program_id(1)
    last_layer = pl.num_programs(0) - 1

    # ----------------- per-layer prologue (first row tile only) -------------
    @pl.when(tile == 0)
    def _prologue():
        w = w_ref[0]                                            # (FP, FP) bf16

        @pl.when(layer == 0)
        def _first_layer():
            # running skip-sum starts at fc_skip(x)
            acc_ref[...] = (
                jnp.dot(x_ref[...], skw_ref[...],
                        preferred_element_type=jnp.float32)
                + skb_ref[...]
            )
            # feature transform of layer 0 uses the raw input features
            xw_ref[...] = jnp.dot(
                x_ref[...], w, preferred_element_type=jnp.float32
            ).astype(jnp.bfloat16)

        @pl.when(layer > 0)
        def _later_layer():
            # acc already holds u_l = fc_skip(x) + h_1 + ... + h_l
            xw_ref[...] = jnp.dot(
                acc_ref[...].astype(jnp.bfloat16), w,
                preferred_element_type=jnp.float32
            ).astype(jnp.bfloat16)

    # ---------- per-row-tile aggregation: PReLU(A[tile] @ XW + b) -----------
    h = (
        jnp.dot(a_ref[...], xw_ref[...], preferred_element_type=jnp.float32)
        + b_ref[0]
    )
    h = jnp.where(h > 0.0, h, alpha_ref[...] * h)               # PReLU (f32)

    # fold this layer's output into the running skip-sum (not needed after
    # the last layer)
    @pl.when(layer < last_layer)
    def _accumulate():
        row0 = pl.multiple_of(tile * tm, tm)
        acc_ref[pl.ds(row0, tm), :] = acc_ref[pl.ds(row0, tm), :] + h

    o_ref[...] = h        # only the last layer's writes survive in HBM


# ------------------------------ wrapper --------------------------------------

def _round_up(v, m):
    return (v + m - 1) // m * m


def _pad2(a, rows, cols):
    return jnp.zeros((rows, cols), a.dtype).at[: a.shape[0], : a.shape[1]].set(a)


def _pick_row_tile(n_pad):
    """Largest row tile in {512, 256, 128} dividing n_pad whose double-buffered
    bf16 A_hat tiles stay within a conservative VMEM budget (v7x: 64 MiB/TC)."""
    budget = 24 * 1024 * 1024
    for t in (512, 256, 128):
        if n_pad % t == 0 and 2 * 2 * t * n_pad <= budget:
            return t
    return 128


def encoder_gcl_forward(params, x, a_hat, k, skip=True, row_tile=None):
    """Mirrors Encoder_gcl.forward for the skip=True branch (module default)."""
    if not skip:
        # TODO(synk): skip=False branch not implemented (per-layer widths are
        # 2*out_ch and the original applies PReLU(out_ch) to 2*out_ch tensors).
        raise NotImplementedError("Only the skip=True branch is implemented.")
    assert k >= 2 and len(params["conv_w"]) == k

    n, in_ch = x.shape
    out_ch = params["conv_w"][0].shape[1]
    fp = _round_up(max(in_ch, out_ch), _FP_ALIGN)   # padded feature width
    n_pad = _round_up(n, _N_ALIGN)                  # padded node count
    tm = row_tile if row_tile is not None else _pick_row_tile(n_pad)
    assert n_pad % tm == 0
    n_tiles = n_pad // tm

    f32, bf16 = jnp.float32, jnp.bfloat16

    # Pad + stack parameters once (plain JAX, cheap).  MXU operands -> bf16,
    # epilogue params (bias, alpha) stay f32.
    a_p = _pad2(a_hat.astype(f32), n_pad, n_pad).astype(bf16)
    x_p = _pad2(x.astype(f32), n_pad, fp).astype(bf16)
    w_stk = jnp.stack([_pad2(w, fp, fp) for w in params["conv_w"]]).astype(bf16)
    b_stk = jnp.stack([_pad2(b, 1, fp) for b in params["conv_b"]]).astype(f32)
    skw_p = _pad2(params["fc_skip_w"], fp, fp).astype(bf16)
    skb_p = _pad2(params["fc_skip_b"], 1, fp).astype(f32)
    alpha_p = _pad2(params["alpha"], 1, fp).astype(f32)

    out = pl.pallas_call(
        functools.partial(_encoder_kernel, tm=tm),
        out_shape=jax.ShapeDtypeStruct((n_pad, fp), f32),
        grid=(k, n_tiles),                                      # (layer, row tile)
        in_specs=[
            pl.BlockSpec((tm, n_pad), lambda l, i: (i, 0)),     # A_hat row tile
            pl.BlockSpec((n_pad, fp), lambda l, i: (0, 0)),     # X (resident)
            pl.BlockSpec((1, fp, fp), lambda l, i: (l, 0, 0)),  # W_l
            pl.BlockSpec((1, 1, fp), lambda l, i: (l, 0, 0)),   # b_l
            pl.BlockSpec((fp, fp), lambda l, i: (0, 0)),        # fc_skip W
            pl.BlockSpec((1, fp), lambda l, i: (0, 0)),         # fc_skip b
            pl.BlockSpec((1, fp), lambda l, i: (0, 0)),         # PReLU alpha
        ],
        out_specs=pl.BlockSpec((tm, fp), lambda l, i: (i, 0)),
        scratch_shapes=[
            pltpu.VMEM((n_pad, fp), f32),    # acc : running skip-sum
            pltpu.VMEM((n_pad, fp), bf16),   # xw  : X@W of the current layer
        ],
        compiler_params=pltpu.CompilerParams(
            # Scratch (acc/xw) carries dependencies across BOTH axes, so
            # neither may be split across cores.
            dimension_semantics=("arbitrary", "arbitrary"),
            vmem_limit_bytes=48 * 1024 * 1024,   # headroom under v7x's 64 MiB
        ),
    )(a_p, x_p, w_stk, b_stk, skw_p, skb_p, alpha_p)

    return out[:n, :out_ch]


# ----------------------- graph normalization & params ------------------------

def gcn_normalize(edge_index, num_nodes):
    """Dense D^{-1/2}(A+I)D^{-1/2}, matching PyG gcn_norm with unit weights."""
    src, dst = edge_index[0], edge_index[1]
    a = jnp.zeros((num_nodes, num_nodes), jnp.float32)
    a = a.at[dst, src].add(1.0)                    # A[target, source] = 1
    a = a + jnp.eye(num_nodes, dtype=jnp.float32)  # add self loops
    deg = jnp.sum(a, axis=1)
    dinv = jnp.where(deg > 0, 1.0 / jnp.sqrt(deg), 0.0)
    return dinv[:, None] * a * dinv[None, :]


def init_params(key, in_channels, out_channels, k):
    """Deterministic synthetic parameters matching Encoder_gcl(skip=True)."""
    keys = jax.random.split(key, 2 * k + 2)
    conv_w, conv_b = [], []
    dims = [(in_channels, out_channels)] + [(out_channels, out_channels)] * (k - 1)
    for i, (fi, fo) in enumerate(dims):
        conv_w.append(jax.random.normal(keys[2 * i], (fi, fo), jnp.float32) * 0.1)
        conv_b.append(jax.random.normal(keys[2 * i + 1], (1, fo), jnp.float32) * 0.1)
    return {
        "conv_w": conv_w,
        "conv_b": conv_b,
        "fc_skip_w": jax.random.normal(keys[-2], (in_channels, out_channels),
                                       jnp.float32) * 0.1,
        "fc_skip_b": jax.random.normal(keys[-1], (1, out_channels),
                                       jnp.float32) * 0.1,
        # nn.PReLU(out_channels) default init: 0.25 per channel (shared layer)
        "alpha": jnp.full((1, out_channels), 0.25, jnp.float32),
    }


def _reference_forward(params, x, a_hat, k):
    """Pure-JAX f32 reference of Encoder_gcl.forward (skip=True branch)."""
    alpha = params["alpha"]

    def layer(h, w, b):
        z = a_hat @ (h @ w) + b
        return jnp.where(z > 0, z, alpha * z)

    h = layer(x, params["conv_w"][0], params["conv_b"][0])
    hs = [x @ params["fc_skip_w"] + params["fc_skip_b"], h]
    for i in range(1, k):
        u = sum(hs)
        hs.append(layer(u, params["conv_w"][i], params["conv_b"][i]))
    return hs[-1]


def _ring_edges(n):
    src = jnp.arange(n, dtype=jnp.int32)
    dst = (src + 1) % n
    return jnp.stack(
        [jnp.concatenate([src, dst]), jnp.concatenate([dst, src])], axis=0
    )


def _run_case(key, n, in_ch, out_ch, k, row_tile=None):
    k_x, k_p = jax.random.split(key)
    x = jax.random.normal(k_x, (n, in_ch), jnp.float32)
    a_hat = gcn_normalize(_ring_edges(n), n)
    params = init_params(k_p, in_ch, out_ch, k)

    out = encoder_gcl_forward(params, x, a_hat, k, skip=True, row_tile=row_tile)
    out = jax.block_until_ready(out)
    assert out.shape == (n, out_ch), out.shape
    assert bool(jnp.all(jnp.isfinite(out)))

    # sanity vs. pure-JAX f32 reference (bf16 MXU operands -> loose tolerance)
    ref = _reference_forward(params, x, a_hat, k)
    assert bool(jnp.allclose(out, ref, atol=0.2, rtol=0.2)), (
        float(jnp.max(jnp.abs(out - ref)))
    )


# ---------------------------------- main -------------------------------------

if __name__ == "__main__":
    key = jax.random.PRNGKey(0)
    k1, k2 = jax.random.split(key)

    # small case: single row tile, padding of both nodes and features
    _run_case(k1, n=8, in_ch=16, out_ch=32, k=3)

    # multi-row-tile case: N=200 pads to 256, forced row tile 128 -> 2 tiles
    _run_case(k2, n=200, in_ch=16, out_ch=32, k=4, row_tile=128)

    print("KERNEL_OK")
</pallas_src>

<mosaic_0001>
module attributes {stable_mosaic.version = 11 : i64} {
  func.func @_encoder_kernel(%arg0: i32, %arg1: i32, %arg2: memref<128x128xbf16, #tpu.memory_space<vmem>>, %arg3: memref<128x128xbf16, #tpu.memory_space<vmem>>, %arg4: memref<1x128x128xbf16, #tpu.memory_space<vmem>>, %arg5: memref<1x1x128xf32, #tpu.memory_space<vmem>>, %arg6: memref<128x128xbf16, #tpu.memory_space<vmem>>, %arg7: memref<1x128xf32, #tpu.memory_space<vmem>>, %arg8: memref<1x128xf32, #tpu.memory_space<vmem>>, %arg9: memref<128x128xf32, #tpu.memory_space<vmem>>, %arg10: memref<128x128xf32, #tpu.memory_space<vmem>>, %arg11: memref<128x128xbf16, #tpu.memory_space<vmem>>) attributes {dimension_semantics = [#tpu.dimension_semantics<arbitrary>, #tpu.dimension_semantics<arbitrary>], iteration_bounds = array<i64: 3, 1>, scalar_prefetch = 0 : i64, scratch_operands = 2 : i64, tpu.core_type = #tpu.core_type<tc>, window_params = [{transform_indices = @transform_0, window_bounds = array<i64: 128, 128>}, {pipeline_mode = #tpu.pipeline_mode<synchronous>, transform_indices = @transform_1, window_bounds = array<i64: 128, 128>}, {transform_indices = @transform_2, window_bounds = array<i64: 1, 128, 128>}, {transform_indices = @transform_3, window_bounds = array<i64: 1, 1, 128>}, {pipeline_mode = #tpu.pipeline_mode<synchronous>, transform_indices = @transform_4, window_bounds = array<i64: 128, 128>}, {pipeline_mode = #tpu.pipeline_mode<synchronous>, transform_indices = @transform_5, window_bounds = array<i64: 1, 128>}, {pipeline_mode = #tpu.pipeline_mode<synchronous>, transform_indices = @transform_6, window_bounds = array<i64: 1, 128>}, {transform_indices = @transform_7, window_bounds = array<i64: 128, 128>}]} {
    %c0_i32 = arith.constant 0 : i32
    %0 = arith.cmpi eq, %arg1, %c0_i32 : i32
    %1 = arith.extui %0 : i1 to i32
    %c0_i32_0 = arith.constant 0 : i32
    %2 = arith.cmpi ne, %1, %c0_i32_0 : i32
    scf.if %2 {
      %c0_13 = arith.constant 0 : index
      %c0_14 = arith.constant 0 : index
      %c0_15 = arith.constant 0 : index
      %20 = vector.load %arg4[%c0_13, %c0_14, %c0_15] : memref<1x128x128xbf16, #tpu.memory_space<vmem>>, vector<1x128x128xbf16>
      %21 = vector.shape_cast %20 : vector<1x128x128xbf16> to vector<128x128xbf16>
      %c0_i32_16 = arith.constant 0 : i32
      %22 = arith.cmpi eq, %arg0, %c0_i32_16 : i32
      %23 = arith.extui %22 : i1 to i32
      %c0_i32_17 = arith.constant 0 : i32
      %24 = arith.cmpi ne, %23, %c0_i32_17 : i32
      scf.if %24 {
        %c0_20 = arith.constant 0 : index
        %c0_21 = arith.constant 0 : index
        %28 = vector.load %arg3[%c0_20, %c0_21] : memref<128x128xbf16, #tpu.memory_space<vmem>>, vector<128x128xbf16>
        %c0_22 = arith.constant 0 : index
        %c0_23 = arith.constant 0 : index
        %29 = vector.load %arg6[%c0_22, %c0_23] : memref<128x128xbf16, #tpu.memory_space<vmem>>, vector<128x128xbf16>
        %cst_24 = arith.constant dense<0.000000e+00> : vector<128x128xf32>
        %30 = tpu.matmul %28, %29, %cst_24 {dimension_numbers = #tpu.dot_dimension_numbers<[1], [0], [0], [1], [0, 0, 1, 1], [], []>} : vector<128x128xbf16>, vector<128x128xbf16>, vector<128x128xf32> -> vector<128x128xf32>
        %c0_25 = arith.constant 0 : index
        %c0_26 = arith.constant 0 : index
        %31 = vector.load %arg7[%c0_25, %c0_26] : memref<1x128xf32, #tpu.memory_space<vmem>>, vector<1x128xf32>
        %32 = vector.broadcast %31 : vector<1x128xf32> to vector<128x128xf32>
        %33 = arith.addf %30, %32 : vector<128x128xf32>
        %c0_27 = arith.constant 0 : index
        %c0_28 = arith.constant 0 : index
        %34 = vector.load %arg10[%c0_27, %c0_28] : memref<128x128xf32, #tpu.memory_space<vmem>>, vector<128x128xf32>
        tpu.vector_store %arg10[%c0_27, %c0_28], %33 {strides = array<i32>} : memref<128x128xf32, #tpu.memory_space<vmem>>, vector<128x128xf32>,
        %c0_29 = arith.constant 0 : index
        %c0_30 = arith.constant 0 : index
        %35 = vector.load %arg3[%c0_29, %c0_30] : memref<128x128xbf16, #tpu.memory_space<vmem>>, vector<128x128xbf16>
        %cst_31 = arith.constant dense<0.000000e+00> : vector<128x128xf32>
        %36 = tpu.matmul %35, %21, %cst_31 {dimension_numbers = #tpu.dot_dimension_numbers<[1], [0], [0], [1], [0, 0, 1, 1], [], []>} : vector<128x128xbf16>, vector<128x128xbf16>, vector<128x128xf32> -> vector<128x128xf32>
        %37 = arith.truncf %36 : vector<128x128xf32> to vector<128x128xbf16>
        %c0_32 = arith.constant 0 : index
        %c0_33 = arith.constant 0 : index
        %38 = vector.load %arg11[%c0_32, %c0_33] : memref<128x128xbf16, #tpu.memory_space<vmem>>, vector<128x128xbf16>
        tpu.vector_store %arg11[%c0_32, %c0_33], %37 {strides = array<i32>} : memref<128x128xbf16, #tpu.memory_space<vmem>>, vector<128x128xbf16>,
      } else {
      }
      %c0_i32_18 = arith.constant 0 : i32
      %25 = arith.cmpi sgt, %arg0, %c0_i32_18 : i32
      %26 = arith.extui %25 : i1 to i32
      %c0_i32_19 = arith.constant 0 : i32
      %27 = arith.cmpi ne, %26, %c0_i32_19 : i32
      scf.if %27 {
        %c0_20 = arith.constant 0 : index
        %c0_21 = arith.constant 0 : index
        %28 = vector.load %arg10[%c0_20, %c0_21] : memref<128x128xf32, #tpu.memory_space<vmem>>, vector<128x128xf32>
        %29 = arith.truncf %28 : vector<128x128xf32> to vector<128x128xbf16>
        %cst_22 = arith.constant dense<0.000000e+00> : vector<128x128xf32>
        %30 = tpu.matmul %29, %21, %cst_22 {dimension_numbers = #tpu.dot_dimension_numbers<[1], [0], [0], [1], [0, 0, 1, 1], [], []>} : vector<128x128xbf16>, vector<128x128xbf16>, vector<128x128xf32> -> vector<128x128xf32>
        %31 = arith.truncf %30 : vector<128x128xf32> to vector<128x128xbf16>
        %c0_23 = arith.constant 0 : index
        %c0_24 = arith.constant 0 : index
        %32 = vector.load %arg11[%c0_23, %c0_24] : memref<128x128xbf16, #tpu.memory_space<vmem>>, vector<128x128xbf16>
        tpu.vector_store %arg11[%c0_23, %c0_24], %31 {strides = array<i32>} : memref<128x128xbf16, #tpu.memory_space<vmem>>, vector<128x128xbf16>,
      } else {
      }
    } else {
    }
    %c0 = arith.constant 0 : index
    %c0_1 = arith.constant 0 : index
    %3 = vector.load %arg2[%c0, %c0_1] : memref<128x128xbf16, #tpu.memory_space<vmem>>, vector<128x128xbf16>
    %c0_2 = arith.constant 0 : index
    %c0_3 = arith.constant 0 : index
    %4 = vector.load %arg11[%c0_2, %c0_3] : memref<128x128xbf16, #tpu.memory_space<vmem>>, vector<128x128xbf16>
    %cst = arith.constant dense<0.000000e+00> : vector<128x128xf32>
    %5 = tpu.matmul %3, %4, %cst {dimension_numbers = #tpu.dot_dimension_numbers<[1], [0], [0], [1], [0, 0, 1, 1], [], []>} : vector<128x128xbf16>, vector<128x128xbf16>, vector<128x128xf32> -> vector<128x128xf32>
    %c0_4 = arith.constant 0 : index
    %c0_5 = arith.constant 0 : index
    %c0_6 = arith.constant 0 : index
    %6 = vector.load %arg5[%c0_4, %c0_5, %c0_6] : memref<1x1x128xf32, #tpu.memory_space<vmem>>, vector<1x1x128xf32>
    %7 = vector.shape_cast %6 : vector<1x1x128xf32> to vector<1x128xf32>
    %8 = vector.broadcast %7 : vector<1x128xf32> to vector<128x128xf32>
    %9 = arith.addf %5, %8 : vector<128x128xf32>
    %cst_7 = arith.constant 0.000000e+00 : f32
    %10 = vector.broadcast %cst_7 : f32 to vector<128x128xf32>
    %11 = arith.cmpf ogt, %9, %10 : vector<128x128xf32>
    %c0_8 = arith.constant 0 : index
    %c0_9 = arith.constant 0 : index
    %12 = vector.load %arg8[%c0_8, %c0_9] : memref<1x128xf32, #tpu.memory_space<vmem>>, vector<1x128xf32>
    %13 = vector.broadcast %12 : vector<1x128xf32> to vector<128x128xf32>
    %14 = arith.mulf %13, %9 : vector<128x128xf32>
    %15 = arith.select %11, %9, %14 : vector<128x128xi1>, vector<128x128xf32>
    %c2_i32 = arith.constant 2 : i32
    %16 = arith.cmpi slt, %arg0, %c2_i32 : i32
    %17 = arith.extui %16 : i1 to i32
    %c0_i32_10 = arith.constant 0 : i32
    %18 = arith.cmpi ne, %17, %c0_i32_10 : i32
    scf.if %18 {
      %c128_i32 = arith.constant 128 : i32
      %20 = arith.muli %arg1, %c128_i32 : i32
      %21 = tpu.assume_multiple %20, 128 : i32
      %22 = arith.index_cast %21 : i32 to index
      %c0_13 = arith.constant 0 : index
      %23 = vector.load %arg10[%22, %c0_13] : memref<128x128xf32, #tpu.memory_space<vmem>>, vector<128x128xf32>
      %24 = arith.addf %23, %15 : vector<128x128xf32>
      %25 = arith.index_cast %21 : i32 to index
      %c0_14 = arith.constant 0 : index
      %26 = vector.load %arg10[%25, %c0_14] : memref<128x128xf32, #tpu.memory_space<vmem>>, vector<128x128xf32>
      tpu.vector_store %arg10[%25, %c0_14], %24 {strides = array<i32>} : memref<128x128xf32, #tpu.memory_space<vmem>>, vector<128x128xf32>,
    } else {
    }
    %c0_11 = arith.constant 0 : index
    %c0_12 = arith.constant 0 : index
    %19 = vector.load %arg9[%c0_11, %c0_12] : memref<128x128xf32, #tpu.memory_space<vmem>>, vector<128x128xf32>
    tpu.vector_store %arg9[%c0_11, %c0_12], %15 {strides = array<i32>} : memref<128x128xf32, #tpu.memory_space<vmem>>, vector<128x128xf32>,
    return
  }
  func.func @transform_0(%arg0: i32, %arg1: i32) -> (i32, i32) {
    %c0_i32 = arith.constant 0 : i32
    %c0_i32_0 = arith.constant 0 : i32
    return %arg1, %c0_i32 : i32, i32
  }
  func.func @transform_1(%arg0: i32, %arg1: i32) -> (i32, i32) {
    %c0_i32 = arith.constant 0 : i32
    %c0_i32_0 = arith.constant 0 : i32
    %c0_i32_1 = arith.constant 0 : i32
    return %c0_i32, %c0_i32_0 : i32, i32
  }
  func.func @transform_2(%arg0: i32, %arg1: i32) -> (i32, i32, i32) {
    %c0_i32 = arith.constant 0 : i32
    %c0_i32_0 = arith.constant 0 : i32
    %c0_i32_1 = arith.constant 0 : i32
    return %arg0, %c0_i32, %c0_i32_0 : i32, i32, i32
  }
  func.func @transform_3(%arg0: i32, %arg1: i32) -> (i32, i32, i32) {
    %c0_i32 = arith.constant 0 : i32
    %c0_i32_0 = arith.constant 0 : i32
    %c0_i32_1 = arith.constant 0 : i32
    return %arg0, %c0_i32, %c0_i32_0 : i32, i32, i32
  }
  func.func @transform_4(%arg0: i32, %arg1: i32) -> (i32, i32) {
    %c0_i32 = arith.constant 0 : i32
    %c0_i32_0 = arith.constant 0 : i32
    %c0_i32_1 = arith.constant 0 : i32
    return %c0_i32, %c0_i32_0 : i32, i32
  }
  func.func @transform_5(%arg0: i32, %arg1: i32) -> (i32, i32) {
    %c0_i32 = arith.constant 0 : i32
    %c0_i32_0 = arith.constant 0 : i32
    %c0_i32_1 = arith.constant 0 : i32
    return %c0_i32, %c0_i32_0 : i32, i32
  }
  func.func @transform_6(%arg0: i32, %arg1: i32) -> (i32, i32) {
    %c0_i32 = arith.constant 0 : i32
    %c0_i32_0 = arith.constant 0 : i32
    %c0_i32_1 = arith.constant 0 : i32
    return %c0_i32, %c0_i32_0 : i32, i32
  }
  func.func @transform_7(%arg0: i32, %arg1: i32) -> (i32, i32) {
    %c0_i32 = arith.constant 0 : i32
    %c0_i32_0 = arith.constant 0 : i32
    return %arg1, %c0_i32 : i32, i32
  }
}

</mosaic_0001>

<bundles_post_ra>
// kernel: tpu_custom_call.1
= control target key start
LH: loop header
LB: loop body
LE: loop exit
PB: predicated region body
PF: predicated region fallthrough
CT: control target
= control target key end

     0   :  { %s2868_s0 = inlined_call_operand.hbm [shape: bf16[128,128], index: 0, kind: input, shape index: {}]   ;;  %s2869_s1 = inlined_call_operand.hbm [shape: bf16[128,128], index: 1, kind: input, shape index: {}]   ;;  %s2870_s2 = inlined_call_operand.hbm [shape: bf16[3,128,128], index: 2, kind: input, shape index: {}]   ;;  %s2871_s3 = inlined_call_operand.vmem [shape: f32[3,1,128], index: 3, kind: input, shape index: {}]   ;;  %s2872_s4 = inlined_call_operand.hbm [shape: bf16[128,128], index: 4, kind: input, shape index: {}]   ;;  %s2873_s5 = inlined_call_operand.vmem [shape: f32[1,128], index: 5, kind: input, shape index: {}]   ;;  %s2874_s6 = inlined_call_operand.vmem [shape: f32[1,128], index: 6, kind: input, shape index: {}]   ;;  %s2875_s7 = inlined_call_operand.hbm [shape: f32[128,128], index: 7, kind: output, shape index: {}]  }
   0x1   :  { %2879 = sst [smem:[#allocation17_spill]] %s2868_s0 }
   0x2   :  { %2880 = sst [smem:[#allocation18_spill]] %s2869_s1 }
   0x3   :  { %2881 = sst [smem:[#allocation19_spill]] %s2872_s4 }
   0x4   :  { %12 = vsyncpa [#allocation5], 0 }
   0x5   :  { %13 = vsyncpa [#allocation8], 0 }
   0x6   :  { %14 = vsyncpa [#allocation6], 0  ;;  %s2500_s24 = smov 0   ;;  %s2502_s25 = smov 0  }
   0x7   :  { %s2504_s26 = smov 0   ;;  %s2506_s27 = smov 0  }
   0x8   :  { %s2508_s28 = smov 0   ;;  %s2510_s29 = smov 0  }
   0x9 LB: > { %s2529_s30 = sadd.s32 4294967295, %s2449_s29   ;;  %p93_p0 = scmp.ne.s32.totalorder %s2437_s26, %s2433_s25  ;;  %s2449_s29 = sphi %s2510_s29, %s20_s29   ;;  %s2445_s28 = sphi %s2508_s28, %s2901_s28   ;;  %s2441_s27 = sphi %s2506_s27, %s2900_s27   ;;  %s2437_s26 = sphi %s2504_s26, %s2899_s26   ;;  %s2433_s25 = sphi %s2502_s25, %s2898_s25   ;;  %s2429_s24 = sphi %s2500_s24, %s2897_s24  }
   0xa   : > { %p94_p1 = scmp.eq.s32.totalorder %s2449_s29, 0  ;;  %p99_p2 = scmp.ne.s32.totalorder %s2433_s25, %s2429_s24 }
   0xb   : > { %p2876_p3 = scmp.eq.s32.totalorder %s2529_s30, 0  ;;  %p1654_p4 = scmp.ge.s32.totalorder %s2449_s29, 1 }
   0xc   : > { %p95_p5 = por %p94_p1, %p93_p0  ;;  %p225_p6 = scmp.lt.s32.totalorder %s2449_s29, 4 }
   0xd   : > { %p2540_p7 = por %p2876_p3, %p99_p2  ;;  %s2451_s10 = smov [#allocation4]  }
   0xe   : > { %p2544_p8 = pnand %p1654_p4, %p225_p6  ;;  %s240_s11 = sshll.u32 %s2451_s10, 4  ;;  %s241_s11 = int_to_ptr.vmem [resolvable:$true] %s240_s11 }
   0xf   : > { %p2151_p11 = scmp.lt.s32.totalorder %s2449_s29, 3  ;;  %s2264_s14 = scalar_lea.vmem %s241_s11, 1024 }
  0x10   : > { %p2134_p9 = pneg %p2544_p8  ;;  %p2265_p0 = scmp.ne.s32.totalorder %s241_s11, %s2264_s14 }
  0x11   : > { %p2557_p12 = pnand %p2151_p11, %p95_p5  ;;  %p2272_p4 = scmp.lt.s32.totalorder %s241_s11, %s241_s11 }
  0x12   : > { %p2552_p10 = pnand %p2134_p9, %p2876_p3  ;;  %p2273_p6 = scmp.lt.s32.totalorder %s2264_s14, %s2264_s14 }
  0x14   : > { %p2255_p13 = pneg %p2552_p10  ;;  %p2274_p9 = por %p2273_p6, %p2272_p4 }
  0x16   : > { %p2267_p1 = pnand %p2265_p0, %p2255_p13 }
  0x18   : > { %p2268_p2 = pneg %p2267_p1 }
  0x1a   : > { %p2275_p3 = pnand %p2274_p9, %p2268_p2 }
  0x1c   : > { %2278 = shalt.err (!%p2275_p3)
}
  0x1d   : > { %s2877_s15 = smov 64   ;;  %s2878_s16 = smov 4  }
  0x1e   : > { %s2886_s0 = sld [smem:[#allocation17_spill]]  ;;  %s2454_s19 = smov [#allocation7]  }
  0x1f   : > { %s253_s20 = sshll.u32 %s2454_s19, 4  ;;  %s2455_s21 = smov [#allocation10]   ;;  %s254_s20 = int_to_ptr.vmem [resolvable:$true] %s253_s20 }
  0x20   : > { %s266_s22 = sshll.u32 %s2455_s21, 4  ;;  %s2290_s23 = scalar_lea.vmem %s254_s20, 1024  ;;  %s267_s22 = int_to_ptr.vmem [resolvable:$true] %s266_s22 }
  0x21   : > { %p2291_p5 = scmp.ne.s32.totalorder %s254_s20, %s2290_s23  ;;  %p2298_p0 = scmp.lt.s32.totalorder %s254_s20, %s254_s20 }
  0x22   : > { %p2299_p1 = scmp.lt.s32.totalorder %s2290_s23, %s2290_s23 }
  0x23   : > { %p2293_p3 = pnand %p2291_p5, %p2255_p13 }
  0x24   : > { %2137 = dma.hbm_to_vmem [thread:$0]  (!%p2552_p10), %s2886_s0, 1024, %s241_s11, [#allocation5], %s2877_s15, %s2877_s15, %s2878_s16  }
  0x25   : > { %p2294_p11 = pneg %p2293_p3  ;;  %p2300_p2 = por %p2299_p1, %p2298_p0 }
  0x27   : > { %p2301_p4 = pnand %p2300_p2, %p2294_p11 }
  0x29   : > { %2304 = shalt.err (!%p2301_p4)
}
  0x2a   : > { %s2887_s1 = sld [smem:[#allocation18_spill]]  ;;  %s2316_s11 = scalar_lea.vmem %s267_s22, 1024 }
  0x2b   : > { %p2317_p6 = scmp.ne.s32.totalorder %s267_s22, %s2316_s11  ;;  %p2324_p3 = scmp.lt.s32.totalorder %s267_s22, %s267_s22 }
  0x2c   : > { %p2325_p11 = scmp.lt.s32.totalorder %s2316_s11, %s2316_s11 }
  0x2d   : > { %p2319_p9 = pnand %p2317_p6, %p2255_p13 }
  0x2e   : > { %p2326_p0 = por %p2325_p11, %p2324_p3 }
  0x2f   : > { %p2320_p5 = pneg %p2319_p9 }
  0x30   : > { %2140 = dma.hbm_to_vmem [thread:$0]  (!%p2552_p10), %s2887_s1, 1024, %s254_s20, [#allocation8], %s2877_s15, %s2877_s15, %s2878_s16  }
  0x31   : > { %p2327_p1 = pnand %p2326_p0, %p2320_p5 }
  0x33   : > { %2330 = shalt.err (!%p2327_p1)
}
  0x34   : > { %s2888_s4 = sld [smem:[#allocation19_spill]]  ;;  %s86_s18 = sadd.s32 1, %s2437_s26 }
  0x35   : > { %s32_s19 = sadd.s32 1, %s2445_s28  ;;  %s286_s20 = sand.u32 1, %s2449_s29  }
  0x36   : > { %p34_p13 = scmp.ge.s32.totalorder %s32_s19, 3  ;;  %s288_s12 = sand.u32 1, %s2437_s26  }
  0x37   : > { %s1765_s21 = sshll.u32 %s2445_s28, 10  ;;  %s1659_s23 = sshll.u32 %s288_s12, 6 }
  0x38   : > { %s2903_s19 = smov (%p34_p13, %s32_s19), 0  ;;  %s296_s11 = scalar_lea.hbm %s2870_s2, %s1765_s21 }
  0x39   : > { %s83_s14 = ssub.s32 %s2445_s28, %s2903_s19  ;;  %s290_s17 = scalar_lea.vmem [#allocation9], %s1659_s23 }
  0x3a   : > { %2143 = dma.hbm_to_vmem [thread:$0]  (!%p2552_p10), %s2888_s4, 1024, %s267_s22, [#allocation8], %s2877_s15, %s2877_s15, %s2878_s16  }
  0x3b   : > { %p84_p2 = scmp.eq.s32.totalorder %s83_s14, 0  ;;  %s297_s0 = sshll.u32 %s290_s17, 4  ;;  %s298_s0 = int_to_ptr.vmem [resolvable:$true] %s297_s0 }
  0x3c   : > { %s287_s15 = scalar_lea.sflag [#allocation5], %s286_s20  ;;  %p2333_p10 = pneg %p2557_p12 }
  0x3d   : > { %s2609_s22 = scalar_select %p84_p2, %s2437_s26, %s86_s18  }
  0x3e   : > { %s2344_s16 = scalar_lea.vmem %s298_s0, 1024  ;;  %s2456_s1 = smov [#allocation9]  }
  0x3f   : > { %p2345_p4 = scmp.ne.s32.totalorder %s298_s0, %s2344_s16  ;;  %s2349_s12 = sshll.u32 %s2456_s1, 4  ;;  %s2350_s12 = int_to_ptr.vmem [resolvable:$false] %s2349_s12 }
  0x40   : > { %s2351_s4 = scalar_lea.vmem %s2350_s12, 2048  ;;  %p2352_p5 = scmp.lt.s32.totalorder %s298_s0, %s2350_s12 }
  0x41   : > { %p2347_p6 = pnand %p2345_p4, %p2333_p10  ;;  %p2353_p3 = scmp.lt.s32.totalorder %s2351_s4, %s2344_s16 }
  0x43   : > { %p2348_p9 = pneg %p2347_p6  ;;  %p2354_p11 = por %p2353_p3, %p2352_p5 }
  0x45   : > { %p2355_p0 = pnand %p2354_p11, %p2348_p9 }
  0x47   : > { %2358 = shalt.err (!%p2355_p0)
}
  0x48   : > { %s2889_s18 = smov 4   ;;  %s2890_s21 = smov 64  }
  0x49   : > { %2147 = dma.hbm_to_vmem [thread:$0]  (!%p2557_p12), %s296_s11, 1024, %s298_s0, %s287_s15, %s2890_s21, %s2890_s21, %s2889_s18  }
  0x4a   : > { %315 = sbr.rel (%p2544_p8) target bundleno = 889 (0x379), region = 48  ;;  %p2891_p1 = scmp.eq.s32.totalorder (!%p2544_p8), %s2529_s30, 0 }
  0x4f   : > { %2408 = dma.done.wait (%p2891_p1), [#allocation5], 1024   ;;  %p2892_p13 = pmov %p2891_p1 }
  0x50   : > { %p2893_p2 = pmov %p2891_p1 }
  0x51   : > { %2410 = vsyncadd (%p2892_p13), [#allocation5], 4294966272 }
  0x52   : > { %2412 = dma.done.wait (%p2893_p2), [#allocation8], 1024   ;;  %p2894_p10 = pmov %p2891_p1 }
  0x53   : > { %s325_s1 = sand.u32 1, %s2529_s30   ;;  %s327_s0 = sand.u32 1, %s2433_s25  }
  0x54   : > { %2414 = vsyncadd (%p2894_p10), [#allocation8], 4294966272  ;;  %s1665_s4 = sshll.u32 %s327_s0, 6  ;;  %s326_s9 = scalar_lea.sflag [#allocation5], %s325_s1 }
  0x55   : > { %s329_s13 = scalar_lea.vmem [#allocation9], %s1665_s4 }
  0x56   : > { %2416 = dma.done.wait (%p2540_p7), %s326_s9, 1024  }
  0x57   : > { %2418 = vsyncadd (%p2540_p7), %s326_s9, 4294966272  ;;  %p2895_p8 = pmov %p2891_p1 }
  0x58   : > { %p2896_p12 = pmov %p2891_p1 }
  0x59   : > { %2420 = dma.done.wait (%p2895_p8), [#allocation8], 1024  }
  0x5a   : > { %2422 = vsyncadd (%p2896_p12), [#allocation8], 4294966272  ;;  %p363_p4 = scmp.lt.s32.totalorder %s2441_s27, 2  ;;  %v2646_v0 = vld [vmem:[%s329_s13] sm:$0xf]  ;;  %p1667_p7 = scmp.ne.s32.totalorder %s2441_s27, 0 }
  0x5b   : > { %v2648_v1 = vld [vmem:[%s329_s13 + $0x4] sm:$0xf]  ;;  %v2650_v2 = vld [vmem:[%s329_s13 + $0x8] sm:$0xf]  ;;  %v2652_v3 = vld [vmem:[%s329_s13 + $0xc] sm:$0xf] }
  0x5c   : > { %s2640_s15 = scalar_select %p363_p4, %s2441_s27, 2  ;;  %v2654_v4 = vld [vmem:[%s329_s13 + $0x10] sm:$0xf]  ;;  %v2656_v5 = vld [vmem:[%s329_s13 + $0x14] sm:$0xf] }
  0x5d   : > { %v2658_v6 = vld [vmem:[%s329_s13 + $0x18] sm:$0xf]  ;;  %v2660_v7 = vld [vmem:[%s329_s13 + $0x1c] sm:$0xf]  ;;  %v2662_v8 = vld [vmem:[%s329_s13 + $0x20] sm:$0xf] }
  0x5e   : > { %s365_s23 = scalar_lea.vmem %s2871_s3, %s2640_s15  ;;  %v2664_v9 = vld [vmem:[%s329_s13 + $0x24] sm:$0xf]  ;;  %v2666_v10 = vld [vmem:[%s329_s13 + $0x28] sm:$0xf]  ;;  %v2668_v11 = vld [vmem:[%s329_s13 + $0x2c] sm:$0xf] }
  0x5f   : > { %v2670_v12 = vld [vmem:[%s329_s13 + $0x30] sm:$0xf]  ;;  %v2672_v13 = vld [vmem:[%s329_s13 + $0x34] sm:$0xf]  ;;  %v2674_v14 = vld [vmem:[%s329_s13 + $0x38] sm:$0xf] }
  0x60   : > { %v2676_v15 = vld [vmem:[%s329_s13 + $0x3c] sm:$0xf]  ;;  %391 = sbr.rel (%p1667_p7) target bundleno = 361 (0x169), region = 72 }
  0x65   : > { %v1700_v16 = vcombine.low %v2674_v14, %v2676_v15  ;;  %v2213_v17 = vld [vmem:[#allocation10 + $0x38] sm:$0xff]   ;;  %v1699_v18 = vcombine.low %v2670_v12, %v2672_v13  ;;  %v2214_v19 = vld [vmem:[#allocation10 + $0x30] sm:$0xff]   ;;  %v1698_v20 = vcombine.low %v2666_v10, %v2668_v11  ;;  %v2215_v21 = vld [vmem:[#allocation10 + $0x28] sm:$0xff]   ;;  %v1697_v23 = vcombine.low %v2662_v8, %v2664_v9 }
  0x66   : > { %1956 = vmatprep.subr.bf16.mxu0 %v2213_v17  ;;  %v2216_v22 = vld [vmem:[#allocation10 + $0x20] sm:$0xff]   ;;  %v1696_v26 = vcombine.low %v2658_v6, %v2660_v7  ;;  %v2217_v27 = vld [vmem:[#allocation10 + $0x18] sm:$0xff]   ;;  %v1695_v28 = vcombine.low %v2654_v4, %v2656_v5  ;;  %v2218_v29 = vld [vmem:[#allocation10 + $0x10] sm:$0xff]   ;;  %v1694_v30 = vcombine.low %v2650_v2, %v2652_v3  ;;  %v1693_v32 = vcombine.low %v2646_v0, %v2648_v1 }
  0x67   : > { %1988 = vmatprep.subr.bf16.mxu1 %v1700_v16  ;;  %1957 = vmatpush3.bf16.msra.mxu0 %v2213_v17  ;;  %v2221_v24 = vld [vmem:[#allocation7] sm:$0xff]   ;;  %v2219_v31 = vld [vmem:[#allocation10 + $0x8] sm:$0xff]   ;;  %v2225_v36 = vld [vmem:[#allocation7 + $0x10] sm:$0xff]  }
  0x68   : > { %1989 = vmatpush3.bf16.msra.mxu1 %v1700_v16  ;;  %1958 = vmatprep.subr.bf16.mxu0 %v2214_v19  ;;  %v2222_v25 = vld [vmem:[#allocation7] sm:$0xff]   ;;  %v2223_v34 = vld [vmem:[#allocation7 + $0x8] sm:$0xff]   ;;  %v2226_v37 = vld [vmem:[#allocation7 + $0x10] sm:$0xff]  }
  0x69   : > { %1990 = vmatprep.subr.bf16.mxu1 %v1699_v18  ;;  %2004 = vmatprep.mubr.bf16.mxu1 %v2221_v24  ;;  %v2220_v33 = vld [vmem:[#allocation10] sm:$0xff]   ;;  %v2224_v35 = vld [vmem:[#allocation7 + $0x8] sm:$0xff]   ;;  %v2227_v38 = vld [vmem:[#allocation7 + $0x18] sm:$0xff]  }
  0x6a   : > { %1972 = vmatprep.mubr.bf16.mxu0 %v2222_v25  ;;  %v2228_v39 = vld [vmem:[#allocation7 + $0x18] sm:$0xff]   ;;  %v2229_v40 = vld [vmem:[#allocation7 + $0x20] sm:$0xff]   ;;  %v2231_v42 = vld [vmem:[#allocation7 + $0x28] sm:$0xff]  }
  0x6b   : > { %1959 = vmatpush3.bf16.msra.mxu0 %v2214_v19  ;;  %v2230_v41 = vld [vmem:[#allocation7 + $0x20] sm:$0xff]   ;;  %v2232_v43 = vld [vmem:[#allocation7 + $0x28] sm:$0xff]   ;;  %v2233_v44 = vld [vmem:[#allocation7 + $0x30] sm:$0xff]  }
  0x6c   : > { %1991 = vmatpush3.bf16.msra.mxu1 %v1699_v18  ;;  %1960 = vmatprep.subr.bf16.mxu0 %v2215_v21  ;;  %v2234_v45 = vld [vmem:[#allocation7 + $0x30] sm:$0xff]   ;;  %v2235_v46 = vld [vmem:[#allocation7 + $0x38] sm:$0xff]   ;;  %v2698_v48 = vld [vmem:[%s2873_s5] ss:$0 sm:$0xff] }
  0x6d   : > { %1992 = vmatprep.subr.bf16.mxu1 %v1698_v20  ;;  %v2236_v47 = vld [vmem:[#allocation7 + $0x38] sm:$0xff]  }
  0x6f   : > { %1961 = vmatpush3.bf16.msra.mxu0 %v2215_v21 }
  0x70   : > { %1993 = vmatpush3.bf16.msra.mxu1 %v1698_v20  ;;  %1962 = vmatprep.subr.bf16.mxu0 %v2216_v22 }
  0x71   : > { %1994 = vmatprep.subr.bf16.mxu1 %v1697_v23 }
  0x73   : > { %1963 = vmatpush3.bf16.msra.mxu0 %v2216_v22 }
  0x74   : > { %1995 = vmatpush3.bf16.msra.mxu1 %v1697_v23  ;;  %1964 = vmatprep.subr.bf16.mxu0 %v2217_v27 }
  0x75   : > { %1996 = vmatprep.subr.bf16.mxu1 %v1696_v26 }
  0x77   : > { %1965 = vmatpush3.bf16.msra.mxu0 %v2217_v27 }
  0x78   : > { %1997 = vmatpush3.bf16.msra.mxu1 %v1696_v26  ;;  %1966 = vmatprep.subr.bf16.mxu0 %v2218_v29 }
  0x79   : > { %1998 = vmatprep.subr.bf16.mxu1 %v1695_v28 }
  0x7b   : > { %1967 = vmatpush3.bf16.msra.mxu0 %v2218_v29 }
  0x7c   : > { %1999 = vmatpush3.bf16.msra.mxu1 %v1695_v28  ;;  %1968 = vmatprep.subr.bf16.mxu0 %v2219_v31 }
  0x7d   : > { %2000 = vmatprep.subr.bf16.mxu1 %v1694_v30 }
  0x7f   : > { %1969 = vmatpush3.bf16.msra.mxu0 %v2219_v31 }
  0x80   : > { %2001 = vmatpush3.bf16.msra.mxu1 %v1694_v30  ;;  %1970 = vmatprep.subr.bf16.mxu0 %v2220_v33 }
  0x81   : > { %2002 = vmatprep.subr.bf16.mxu1 %v1693_v32 }
  0x83   : > { %1971 = vmatpush3.bf16.msra.mxu0 %v2220_v33 }
  0x84   : > { %2003 = vmatpush3.bf16.msra.mxu1 %v1693_v32 }
  0x86   : > { %1973 = vmatmul.mubr.bf16.vlgmr.msra.gmra.mxu0 %v2224_v35 }
  0x87   : > { %2005 = vmatmul.mubr.bf16.vlgmr.msra.gmra.mxu1 %v2223_v34  ;;  %1976 = vmatprep.mubr.bf16.mxu0 %v2226_v37 }
  0x88   : > { %2008 = vmatprep.mubr.bf16.mxu1 %v2225_v36 }
  0x8e   : > { %1977 = vmatmul.mubr.bf16.gmra.mxu0 %v2228_v39 }
  0x8f   : > { %2009 = vmatmul.mubr.bf16.gmra.mxu1 %v2227_v38  ;;  %1980 = vmatprep.mubr.bf16.mxu0 %v2230_v41 }
  0x90   : > { %2012 = vmatprep.mubr.bf16.mxu1 %v2229_v40 }
  0x96   : > { %1981 = vmatmul.mubr.bf16.gmra.mxu0 %v2232_v43 }
  0x97   : > { %2013 = vmatmul.mubr.bf16.gmra.mxu1 %v2231_v42  ;;  %1984 = vmatprep.mubr.bf16.mxu0 %v2234_v45 }
  0x98   : > { %2016 = vmatprep.mubr.bf16.mxu1 %v2233_v44 }
  0x9e   : > { %1985 = vmatmul.mubr.bf16.gmra.mxu0 %v2236_v47 }
  0x9f   : > { %2017 = vmatmul.mubr.bf16.gmra.mxu1 %v2235_v46 }
 0x146   : > { %v1974_v50 = vpop.f32.mrf.mxu0 }
 0x147   : > { %v2006_v49 = vpop.f32.mrf.mxu1  ;;  %v570_v51 = vadd.f32 %v1974_v50, %v2698_v48 }
 0x148   : > { %v561_v53 = vpop.f32.mrf.mxu0 }
 0x149   : > { %v786_v52 = vpop.f32.mrf.mxu1  ;;  %626 = vst [vmem:[#allocation2 + $0x58] sm:$0xff] %v570_v51  ;;  %v562_v54 = vadd.f32 %v2698_v48, %v561_v53 }
 0x14a   : > { %v1975_v56 = vpop.f32.mrf.mxu0 }
 0x14b   : > { %v2007_v55 = vpop.f32.mrf.mxu1  ;;  %624 = vst [vmem:[#allocation2 + $0x30] sm:$0xff] %v562_v54  ;;  %v573_v58 = vadd.f32 %v1975_v56, %v2698_v48 }
 0x14c   : > { %v1806_v57 = vpack.c.bf16 %v2007_v55, %v2006_v49  ;;  %v564_v60 = vpop.f32.mrf.mxu0 }
 0x14d   : > { %v789_v59 = vpop.f32.mrf.mxu1  ;;  %627 = vst [vmem:[#allocation2 + $0x18] sm:$0xff] %v573_v58  ;;  %v565_v62 = vadd.f32 %v2698_v48, %v564_v60 }
 0x14e   : > { %1878 = vst [vmem:[#allocation3 + $0x8] sm:$0xff] %v1806_v57   ;;  %v1801_v61 = vpack.c.bf16 %v789_v59, %v786_v52  ;;  %v1978_v16 = vpop.f32.mrf.mxu0 }
 0x14f   : > { %v2010_v63 = vpop.f32.mrf.mxu1  ;;  %625 = vst [vmem:[#allocation2] sm:$0xff] %v565_v62  ;;  %v586_v17 = vadd.f32 %v1978_v16, %v2698_v48 }
 0x150   : > { %1802 = vst [vmem:[#allocation3] sm:$0xff] %v1801_v61   ;;  %v577_v19 = vpop.f32.mrf.mxu0 }
 0x151   : > { %v802_v18 = vpop.f32.mrf.mxu1  ;;  %630 = vst [vmem:[#allocation2 + $0x8] sm:$0xff] %v586_v17  ;;  %v578_v20 = vadd.f32 %v2698_v48, %v577_v19 }
 0x152   : > { %v1979_v22 = vpop.f32.mrf.mxu0 }
 0x153   : > { %v2011_v21 = vpop.f32.mrf.mxu1  ;;  %628 = vst [vmem:[#allocation2 + $0x50] sm:$0xff] %v578_v20  ;;  %v589_v24 = vadd.f32 %v1979_v22, %v2698_v48 }
 0x154   : > { %v1816_v23 = vpack.c.bf16 %v2011_v21, %v2010_v63  ;;  %v580_v26 = vpop.f32.mrf.mxu0 }
 0x155   : > { %v805_v25 = vpop.f32.mrf.mxu1  ;;  %631 = vst [vmem:[#allocation2 + $0x48] sm:$0xff] %v589_v24  ;;  %v581_v28 = vadd.f32 %v2698_v48, %v580_v26 }
 0x156   : > { %1880 = vst [vmem:[#allocation3 + $0x18] sm:$0xff] %v1816_v23   ;;  %v1811_v27 = vpack.c.bf16 %v805_v25, %v802_v18  ;;  %v1982_v30 = vpop.f32.mrf.mxu0 }
 0x157   : > { %v2014_v29 = vpop.f32.mrf.mxu1  ;;  %629 = vst [vmem:[#allocation2 + $0x68] sm:$0xff] %v581_v28  ;;  %v602_v31 = vadd.f32 %v1982_v30, %v2698_v48 }
 0x158   : > { %1879 = vst [vmem:[#allocation3 + $0x10] sm:$0xff] %v1811_v27   ;;  %v593_v33 = vpop.f32.mrf.mxu0 }
 0x159   : > { %v818_v32 = vpop.f32.mrf.mxu1  ;;  %634 = vst [vmem:[#allocation2 + $0x10] sm:$0xff] %v602_v31  ;;  %v594_v34 = vadd.f32 %v2698_v48, %v593_v33 }
 0x15a   : > { %v1983_v36 = vpop.f32.mrf.mxu0 }
 0x15b   : > { %v2015_v35 = vpop.f32.mrf.mxu1  ;;  %632 = vst [vmem:[#allocation2 + $0x40] sm:$0xff] %v594_v34  ;;  %v605_v38 = vadd.f32 %v1983_v36, %v2698_v48 }
 0x15c   : > { %v1826_v37 = vpack.c.bf16 %v2015_v35, %v2014_v29  ;;  %v596_v40 = vpop.f32.mrf.mxu0 }
 0x15d   : > { %v821_v39 = vpop.f32.mrf.mxu1  ;;  %635 = vst [vmem:[#allocation2 + $0x38] sm:$0xff] %v605_v38  ;;  %v597_v42 = vadd.f32 %v2698_v48, %v596_v40 }
 0x15e   : > { %1882 = vst [vmem:[#allocation3 + $0x28] sm:$0xff] %v1826_v37   ;;  %v1821_v41 = vpack.c.bf16 %v821_v39, %v818_v32  ;;  %v1986_v44 = vpop.f32.mrf.mxu0 }
 0x15f   : > { %v2018_v43 = vpop.f32.mrf.mxu1  ;;  %633 = vst [vmem:[#allocation2 + $0x20] sm:$0xff] %v597_v42  ;;  %v618_v45 = vadd.f32 %v1986_v44, %v2698_v48 }
 0x160   : > { %1881 = vst [vmem:[#allocation3 + $0x20] sm:$0xff] %v1821_v41   ;;  %v609_v47 = vpop.f32.mrf.mxu0 }
 0x161   : > { %v834_v46 = vpop.f32.mrf.mxu1  ;;  %638 = vst [vmem:[#allocation2 + $0x78] sm:$0xff] %v618_v45  ;;  %v610_v49 = vadd.f32 %v2698_v48, %v609_v47 }
 0x162   : > { %v1987_v51 = vpop.f32.mrf.mxu0 }
 0x163   : > { %v2019_v50 = vpop.f32.mrf.mxu1  ;;  %636 = vst [vmem:[#allocation2 + $0x60] sm:$0xff] %v610_v49  ;;  %v621_v53 = vadd.f32 %v1987_v51, %v2698_v48 }
 0x164   : > { %v1836_v52 = vpack.c.bf16 %v2019_v50, %v2018_v43  ;;  %v612_v55 = vpop.f32.mrf.mxu0 }
 0x165   : > { %v837_v54 = vpop.f32.mrf.mxu1  ;;  %639 = vst [vmem:[#allocation2 + $0x28] sm:$0xff] %v621_v53  ;;  %v613_v57 = vadd.f32 %v2698_v48, %v612_v55 }
 0x166   : > { %1884 = vst [vmem:[#allocation3 + $0x38] sm:$0xff] %v1836_v52   ;;  %v1831_v56 = vpack.c.bf16 %v837_v54, %v834_v46 }
 0x167   : > { %637 = vst [vmem:[#allocation2 + $0x70] sm:$0xff] %v613_v57 }
 0x168   : > { %1883 = vst [vmem:[#allocation3 + $0x30] sm:$0xff] %v1831_v56  }
 0x169 PF: > { %p1717_p6 = scmp.le.s32.totalorder %s2441_s27, 0 }
 0x16b   : > { %932 = sbr.rel (%p1717_p6) target bundleno = 612 (0x264), region = 76 }
 0x170   : > { %v1725_v58 = vcombine.low %v2674_v14, %v2676_v15  ;;  %v1724_v59 = vcombine.low %v2670_v12, %v2672_v13  ;;  %v933_v60 = vld [vmem:[#allocation2 + $0x30] sm:$0xff]  ;;  %v934_v61 = vld [vmem:[#allocation2] sm:$0xff]  ;;  %v1723_v17 = vcombine.low %v2666_v10, %v2668_v11  ;;  %v1722_v12 = vcombine.low %v2662_v8, %v2664_v9  ;;  %v936_v9 = vld [vmem:[#allocation2 + $0x18] sm:$0xff] }
 0x171   : > { %v941_v62 = vld [vmem:[#allocation2 + $0x40] sm:$0xff]  ;;  %v949_v16 = vpack.c.bf16 %v934_v61, %v933_v60  ;;  %v1721_v13 = vcombine.low %v2658_v6, %v2660_v7  ;;  %v1720_v10 = vcombine.low %v2654_v4, %v2656_v5  ;;  %v1719_v8 = vcombine.low %v2650_v2, %v2652_v3  ;;  %v935_v7 = vld [vmem:[#allocation2 + $0x58] sm:$0xff]  ;;  %v943_v11 = vld [vmem:[#allocation2 + $0x10] sm:$0xff] }
 0x172   : > { %v942_v63 = vld [vmem:[#allocation2 + $0x20] sm:$0xff]  ;;  %2020 = vmatprep.subr.bf16.mxu0 %v1725_v58  ;;  %2084 = vmatprep.subr.bf16.mxu1 %v1725_v58  ;;  %v1718_v6 = vcombine.low %v2646_v0, %v2648_v1  ;;  %v944_v4 = vld [vmem:[#allocation2 + $0x38] sm:$0xff]  ;;  %v937_v5 = vld [vmem:[#allocation2 + $0x50] sm:$0xff]  ;;  %v950_v2 = vpack.c.bf16 %v936_v9, %v935_v7 }
 0x173   : > { %v953_v48 = vpack.c.bf16 %v942_v63, %v941_v62  ;;  %2021 = vmatpush3.bf16.msra.mxu0 %v1725_v58  ;;  %2092 = vmatpush3.bf16.msra.mxu1 %v1725_v58  ;;  %v938_v14 = vld [vmem:[#allocation2 + $0x68] sm:$0xff]  ;;  %v945_v15 = vld [vmem:[#allocation2 + $0x60] sm:$0xff]  ;;  %v946_v18 = vld [vmem:[#allocation2 + $0x70] sm:$0xff]  ;;  %v954_v3 = vpack.c.bf16 %v944_v4, %v943_v11 }
 0x174   : > { %2022 = vmatprep.subr.bf16.mxu0 %v1724_v59  ;;  %2085 = vmatprep.subr.bf16.mxu1 %v1724_v59  ;;  %v951_v19 = vpack.c.bf16 %v938_v14, %v937_v5  ;;  %v955_v20 = vpack.c.bf16 %v946_v18, %v945_v15  ;;  %v939_v0 = vld [vmem:[#allocation2 + $0x8] sm:$0xff]  ;;  %v947_v21 = vld [vmem:[#allocation2 + $0x78] sm:$0xff] }
 0x175   : > { %2036 = vmatprep.mubr.bf16.mxu0 %v949_v16  ;;  %2044 = vmatprep.mubr.bf16.mxu1 %v953_v48  ;;  %v940_v1 = vld [vmem:[#allocation2 + $0x48] sm:$0xff] }
 0x176   : > { %v948_v22 = vld [vmem:[#allocation2 + $0x28] sm:$0xff]  ;;  %v952_v23 = vpack.c.bf16 %v940_v1, %v939_v0 }
 0x177   : > { %2023 = vmatpush3.bf16.msra.mxu0 %v1724_v59  ;;  %2093 = vmatpush3.bf16.msra.mxu1 %v1724_v59  ;;  %v956_v24 = vpack.c.bf16 %v948_v22, %v947_v21 }
 0x178   : > { %2024 = vmatprep.subr.bf16.mxu0 %v1723_v17  ;;  %2086 = vmatprep.subr.bf16.mxu1 %v1723_v17 }
 0x17b   : > { %2025 = vmatpush3.bf16.msra.mxu0 %v1723_v17  ;;  %2094 = vmatpush3.bf16.msra.mxu1 %v1723_v17 }
 0x17c   : > { %2026 = vmatprep.subr.bf16.mxu0 %v1722_v12  ;;  %2087 = vmatprep.subr.bf16.mxu1 %v1722_v12 }
 0x17f   : > { %2027 = vmatpush3.bf16.msra.mxu0 %v1722_v12  ;;  %2095 = vmatpush3.bf16.msra.mxu1 %v1722_v12 }
 0x180   : > { %2028 = vmatprep.subr.bf16.mxu0 %v1721_v13  ;;  %2088 = vmatprep.subr.bf16.mxu1 %v1721_v13 }
 0x183   : > { %2029 = vmatpush3.bf16.msra.mxu0 %v1721_v13  ;;  %2096 = vmatpush3.bf16.msra.mxu1 %v1721_v13 }
 0x184   : > { %2030 = vmatprep.subr.bf16.mxu0 %v1720_v10  ;;  %2089 = vmatprep.subr.bf16.mxu1 %v1720_v10 }
 0x187   : > { %2031 = vmatpush3.bf16.msra.mxu0 %v1720_v10  ;;  %2097 = vmatpush3.bf16.msra.mxu1 %v1720_v10 }
 0x188   : > { %2032 = vmatprep.subr.bf16.mxu0 %v1719_v8  ;;  %2090 = vmatprep.subr.bf16.mxu1 %v1719_v8 }
 0x18b   : > { %2033 = vmatpush3.bf16.msra.mxu0 %v1719_v8  ;;  %2098 = vmatpush3.bf16.msra.mxu1 %v1719_v8 }
 0x18c   : > { %2034 = vmatprep.subr.bf16.mxu0 %v1718_v6  ;;  %2091 = vmatprep.subr.bf16.mxu1 %v1718_v6 }
 0x18f   : > { %2035 = vmatpush3.bf16.msra.mxu0 %v1718_v6  ;;  %2099 = vmatpush3.bf16.msra.mxu1 %v1718_v6 }
 0x192   : > { %2037 = vmatmul.mubr.bf16.vlgmr.msra.gmra.mxu0 %v950_v2  ;;  %2045 = vmatmul.mubr.bf16.vlgmr.msra.gmra.mxu1 %v954_v3 }
 0x193   : > { %2040 = vmatprep.mubr.bf16.mxu0 %v951_v19  ;;  %2048 = vmatprep.mubr.bf16.mxu1 %v955_v20 }
 0x19a   : > { %2041 = vmatmul.mubr.bf16.gmra.mxu0 %v952_v23  ;;  %2049 = vmatmul.mubr.bf16.gmra.mxu1 %v956_v24 }
 0x252   : > { %v2038_v25 = vpop.f32.mrf.mxu0  ;;  %v2046_v26 = vpop.f32.mrf.mxu1 }
 0x254   : > { %v1039_v27 = vpop.f32.mrf.mxu0  ;;  %v1071_v28 = vpop.f32.mrf.mxu1 }
 0x256   : > { %v2039_v29 = vpop.f32.mrf.mxu0  ;;  %v2047_v30 = vpop.f32.mrf.mxu1 }
 0x257   : > { %v1846_v31 = vpack.c.bf16 %v2039_v29, %v2038_v25  ;;  %v1866_v32 = vpack.c.bf16 %v2047_v30, %v2046_v26 }
 0x258   : > { %v1042_v33 = vpop.f32.mrf.mxu0  ;;  %v1074_v34 = vpop.f32.mrf.mxu1 }
 0x259   : > { %1885 = vst [vmem:[#allocation3 + $0x8] sm:$0xff] %v1846_v31   ;;  %1889 = vst [vmem:[#allocation3 + $0x28] sm:$0xff] %v1866_v32   ;;  %v1841_v35 = vpack.c.bf16 %v1042_v33, %v1039_v27  ;;  %v1861_v36 = vpack.c.bf16 %v1074_v34, %v1071_v28 }
 0x25a   : > { %v2042_v37 = vpop.f32.mrf.mxu0  ;;  %v2050_v38 = vpop.f32.mrf.mxu1 }
 0x25b   : > { %1842 = vst [vmem:[#allocation3] sm:$0xff] %v1841_v35   ;;  %1888 = vst [vmem:[#allocation3 + $0x20] sm:$0xff] %v1861_v36  }
 0x25c   : > { %v1055_v39 = vpop.f32.mrf.mxu0  ;;  %v1087_v40 = vpop.f32.mrf.mxu1 }
 0x25e   : > { %v2043_v41 = vpop.f32.mrf.mxu0  ;;  %v2051_v42 = vpop.f32.mrf.mxu1 }
 0x25f   : > { %v1856_v43 = vpack.c.bf16 %v2043_v41, %v2042_v37  ;;  %v1876_v44 = vpack.c.bf16 %v2051_v42, %v2050_v38 }
 0x260   : > { %v1058_v45 = vpop.f32.mrf.mxu0  ;;  %v1090_v46 = vpop.f32.mrf.mxu1 }
 0x261   : > { %1887 = vst [vmem:[#allocation3 + $0x18] sm:$0xff] %v1856_v43   ;;  %1891 = vst [vmem:[#allocation3 + $0x38] sm:$0xff] %v1876_v44   ;;  %v1851_v47 = vpack.c.bf16 %v1058_v45, %v1055_v39  ;;  %v1871_v49 = vpack.c.bf16 %v1090_v46, %v1087_v40 }
 0x263   : > { %1886 = vst [vmem:[#allocation3 + $0x10] sm:$0xff] %v1851_v47   ;;  %1890 = vst [vmem:[#allocation3 + $0x30] sm:$0xff] %v1871_v49  }
 0x264 PF: > { %v2239_v52 = vld [vmem:[#allocation3 + $0x28] sm:$0xff]   ;;  %v2240_v53 = vld [vmem:[#allocation3 + $0x20] sm:$0xff]   ;;  %v2249_v62 = vld [vmem:[#allocation4 + $0x10] sm:$0xff]   ;;  %p1760_p9 = scmp.ge.s32.totalorder %s2441_s27, 2 }
 0x265   : > { %v2245_v54 = vld [vmem:[#allocation4] sm:$0xff]   ;;  %v2243_v58 = vld [vmem:[#allocation3 + $0x8] sm:$0xff]   ;;  %v2250_v63 = vld [vmem:[#allocation4 + $0x30] sm:$0xff]  }
 0x266   : > { %v2246_v55 = vld [vmem:[#allocation4 + $0x20] sm:$0xff]   ;;  %2068 = vmatprep.mubr.bf16.mxu0 %v2245_v54  ;;  %v2247_v60 = vld [vmem:[#allocation4 + $0x8] sm:$0xff]   ;;  %v2251_v16 = vld [vmem:[#allocation4 + $0x18] sm:$0xff]  }
 0x267   : > { %2076 = vmatprep.mubr.bf16.mxu1 %v2246_v55  ;;  %v2244_v59 = vld [vmem:[#allocation3] sm:$0xff]   ;;  %v2248_v61 = vld [vmem:[#allocation4 + $0x28] sm:$0xff]   ;;  %v2252_v48 = vld [vmem:[#allocation4 + $0x38] sm:$0xff]  }
 0x268   : > { %v2237_v50 = vld [vmem:[#allocation3 + $0x38] sm:$0xff]   ;;  %v2738_v17 = vld [vmem:[%s365_s23] ss:$0 sm:$0xff] }
 0x269   : > { %2052 = vmatprep.subr.bf16.mxu0 %v2237_v50  ;;  %2100 = vmatprep.subr.bf16.mxu1 %v2237_v50  ;;  %v2241_v56 = vld [vmem:[#allocation3 + $0x18] sm:$0xff]   ;;  %v2743_v13 = vld [vmem:[%s2874_s6] ss:$0 sm:$0xff] }
 0x26a   : > { %v2238_v51 = vld [vmem:[#allocation3 + $0x30] sm:$0xff]   ;;  %2053 = vmatpush3.bf16.msra.mxu0 %v2237_v50  ;;  %2108 = vmatpush3.bf16.msra.mxu1 %v2237_v50 }
 0x26b   : > { %2054 = vmatprep.subr.bf16.mxu0 %v2238_v51  ;;  %2101 = vmatprep.subr.bf16.mxu1 %v2238_v51  ;;  %v2242_v57 = vld [vmem:[#allocation3 + $0x10] sm:$0xff]  }
 0x26e   : > { %2055 = vmatpush3.bf16.msra.mxu0 %v2238_v51  ;;  %2109 = vmatpush3.bf16.msra.mxu1 %v2238_v51 }
 0x26f   : > { %2056 = vmatprep.subr.bf16.mxu0 %v2239_v52  ;;  %2102 = vmatprep.subr.bf16.mxu1 %v2239_v52 }
 0x272   : > { %2057 = vmatpush3.bf16.msra.mxu0 %v2239_v52  ;;  %2110 = vmatpush3.bf16.msra.mxu1 %v2239_v52 }
 0x273   : > { %2058 = vmatprep.subr.bf16.mxu0 %v2240_v53  ;;  %2103 = vmatprep.subr.bf16.mxu1 %v2240_v53 }
 0x276   : > { %2059 = vmatpush3.bf16.msra.mxu0 %v2240_v53  ;;  %2111 = vmatpush3.bf16.msra.mxu1 %v2240_v53 }
 0x277   : > { %2060 = vmatprep.subr.bf16.mxu0 %v2241_v56  ;;  %2104 = vmatprep.subr.bf16.mxu1 %v2241_v56 }
 0x27a   : > { %2061 = vmatpush3.bf16.msra.mxu0 %v2241_v56  ;;  %2112 = vmatpush3.bf16.msra.mxu1 %v2241_v56 }
 0x27b   : > { %2062 = vmatprep.subr.bf16.mxu0 %v2242_v57  ;;  %2105 = vmatprep.subr.bf16.mxu1 %v2242_v57 }
 0x27e   : > { %2063 = vmatpush3.bf16.msra.mxu0 %v2242_v57  ;;  %2113 = vmatpush3.bf16.msra.mxu1 %v2242_v57 }
 0x27f   : > { %2064 = vmatprep.subr.bf16.mxu0 %v2243_v58  ;;  %2106 = vmatprep.subr.bf16.mxu1 %v2243_v58 }
 0x282   : > { %2065 = vmatpush3.bf16.msra.mxu0 %v2243_v58  ;;  %2114 = vmatpush3.bf16.msra.mxu1 %v2243_v58 }
 0x283   : > { %2066 = vmatprep.subr.bf16.mxu0 %v2244_v59  ;;  %2107 = vmatprep.subr.bf16.mxu1 %v2244_v59 }
 0x286   : > { %2067 = vmatpush3.bf16.msra.mxu0 %v2244_v59  ;;  %2115 = vmatpush3.bf16.msra.mxu1 %v2244_v59 }
 0x289   : > { %2069 = vmatmul.mubr.bf16.vlgmr.msra.gmra.mxu0 %v2247_v60  ;;  %2077 = vmatmul.mubr.bf16.vlgmr.msra.gmra.mxu1 %v2248_v61 }
 0x28a   : > { %2072 = vmatprep.mubr.bf16.mxu0 %v2249_v62  ;;  %2080 = vmatprep.mubr.bf16.mxu1 %v2250_v63 }
 0x291   : > { %2073 = vmatmul.mubr.bf16.gmra.mxu0 %v2251_v16  ;;  %2081 = vmatmul.mubr.bf16.gmra.mxu1 %v2252_v48 }
 0x349   : > { %v2070_v12 = vpop.f32.mrf.mxu0  ;;  %v2078_v10 = vpop.f32.mrf.mxu1 }
 0x34a   : > { %v1360_v8 = vadd.f32 %v2070_v12, %v2738_v17  ;;  %v1392_v6 = vadd.f32 %v2078_v10, %v2738_v17 }
 0x34b   : > { %v1351_v7 = vpop.f32.mrf.mxu0  ;;  %v1383_v9 = vpop.f32.mrf.mxu1 }
 0x34c   : > { %vm1416_vm0 = vcmp.gt.f32.partialorder %v1360_v8, 0.0  ;;  %v1439_v11 = vmul.f32 %v2743_v13, %v1360_v8  ;;  %vm1424_vm1 = vcmp.gt.f32.partialorder %v1392_v6, 0.0  ;;  %v1447_v4 = vmul.f32 %v2743_v13, %v1392_v6 }
 0x34d   : > { %v1352_v5 = vadd.f32 %v2738_v17, %v1351_v7  ;;  %v1384_v14 = vadd.f32 %v2738_v17, %v1383_v9  ;;  %v2071_v15 = vpop.f32.mrf.mxu0  ;;  %v2079_v18 = vpop.f32.mrf.mxu1 }
 0x34e   : > { %v2751_v2 = vsel %vm1416_vm0, %v1360_v8, %v1439_v11  ;;  %v2753_v3 = vsel %vm1424_vm1, %v1392_v6, %v1447_v4  ;;  %v1363_v19 = vadd.f32 %v2071_v15, %v2738_v17  ;;  %v1395_v20 = vadd.f32 %v2079_v18, %v2738_v17 }
 0x34f   : > { %vm1414_vm2 = vcmp.gt.f32.partialorder %v1352_v5, 0.0  ;;  %v1437_v0 = vmul.f32 %v2743_v13, %v1352_v5  ;;  %vm1422_vm3 = vcmp.gt.f32.partialorder %v1384_v14, 0.0  ;;  %v1445_v1 = vmul.f32 %v2743_v13, %v1384_v14  ;;  %v1354_v21 = vpop.f32.mrf.mxu0  ;;  %v1386_v22 = vpop.f32.mrf.mxu1 }
 0x350   : > { %vm1417_vm4 = vcmp.gt.f32.partialorder %v1363_v19, 0.0  ;;  %v1440_v23 = vmul.f32 %v2743_v13, %v1363_v19  ;;  %vm1425_vm5 = vcmp.gt.f32.partialorder %v1395_v20, 0.0  ;;  %v1448_v24 = vmul.f32 %v2743_v13, %v1395_v20 }
 0x351   : > { %v2761_v25 = vsel %vm1414_vm2, %v1352_v5, %v1437_v0  ;;  %v2763_v26 = vsel %vm1422_vm3, %v1384_v14, %v1445_v1  ;;  %v1355_v27 = vadd.f32 %v2738_v17, %v1354_v21  ;;  %v1387_v28 = vadd.f32 %v2738_v17, %v1386_v22  ;;  %v2074_v29 = vpop.f32.mrf.mxu0  ;;  %v2082_v30 = vpop.f32.mrf.mxu1 }
 0x352   : > { %v2767_v31 = vsel %vm1417_vm4, %v1363_v19, %v1440_v23  ;;  %v2769_v32 = vsel %vm1425_vm5, %v1395_v20, %v1448_v24  ;;  %v1376_v33 = vadd.f32 %v2074_v29, %v2738_v17  ;;  %v1408_v34 = vadd.f32 %v2082_v30, %v2738_v17 }
 0x353   : > { %vm1415_vm6 = vcmp.gt.f32.partialorder %v1355_v27, 0.0  ;;  %v1438_v35 = vmul.f32 %v2743_v13, %v1355_v27  ;;  %vm1423_vm7 = vcmp.gt.f32.partialorder %v1387_v28, 0.0  ;;  %v1446_v36 = vmul.f32 %v2743_v13, %v1387_v28  ;;  %v1367_v37 = vpop.f32.mrf.mxu0  ;;  %v1399_v38 = vpop.f32.mrf.mxu1 }
 0x354   : > { %vm1420_vm8 = vcmp.gt.f32.partialorder %v1376_v33, 0.0  ;;  %v1443_v39 = vmul.f32 %v2743_v13, %v1376_v33  ;;  %vm1428_vm9 = vcmp.gt.f32.partialorder %v1408_v34, 0.0  ;;  %v1451_v40 = vmul.f32 %v2743_v13, %v1408_v34 }
 0x355   : > { %v2777_v41 = vsel %vm1415_vm6, %v1355_v27, %v1438_v35  ;;  %v2779_v42 = vsel %vm1423_vm7, %v1387_v28, %v1446_v36  ;;  %v1368_v43 = vadd.f32 %v2738_v17, %v1367_v37  ;;  %v1400_v44 = vadd.f32 %v2738_v17, %v1399_v38  ;;  %v2075_v45 = vpop.f32.mrf.mxu0  ;;  %v2083_v46 = vpop.f32.mrf.mxu1 }
 0x356   : > { %v2783_v47 = vsel %vm1420_vm8, %v1376_v33, %v1443_v39  ;;  %v2785_v49 = vsel %vm1428_vm9, %v1408_v34, %v1451_v40  ;;  %v1379_v50 = vadd.f32 %v2075_v45, %v2738_v17  ;;  %v1411_v51 = vadd.f32 %v2083_v46, %v2738_v17 }
 0x357   : > { %vm1418_vm10 = vcmp.gt.f32.partialorder %v1368_v43, 0.0  ;;  %v1441_v52 = vmul.f32 %v2743_v13, %v1368_v43  ;;  %vm1426_vm11 = vcmp.gt.f32.partialorder %v1400_v44, 0.0  ;;  %v1449_v53 = vmul.f32 %v2743_v13, %v1400_v44  ;;  %v1370_v54 = vpop.f32.mrf.mxu0  ;;  %v1402_v55 = vpop.f32.mrf.mxu1 }
 0x358   : > { %vm1421_vm12 = vcmp.gt.f32.partialorder %v1379_v50, 0.0  ;;  %v1444_v56 = vmul.f32 %v2743_v13, %v1379_v50  ;;  %vm1429_vm13 = vcmp.gt.f32.partialorder %v1411_v51, 0.0  ;;  %v1452_v57 = vmul.f32 %v2743_v13, %v1411_v51 }
 0x359   : > { %v2793_v58 = vsel %vm1418_vm10, %v1368_v43, %v1441_v52  ;;  %v2795_v59 = vsel %vm1426_vm11, %v1400_v44, %v1449_v53  ;;  %v1371_v60 = vadd.f32 %v2738_v17, %v1370_v54  ;;  %v1403_v61 = vadd.f32 %v2738_v17, %v1402_v55  ;;  %1472 = sbr.rel (%p1760_p9) target bundleno = 873 (0x369), region = 80 }
 0x35a   : > { %v2799_v62 = vsel %vm1421_vm12, %v1379_v50, %v1444_v56  ;;  %v2801_v63 = vsel %vm1429_vm13, %v1411_v51, %v1452_v57 }
 0x35b   : > { %vm1419_vm14 = vcmp.gt.f32.partialorder %v1371_v60, 0.0  ;;  %v1442_v16 = vmul.f32 %v2743_v13, %v1371_v60  ;;  %vm1427_vm15 = vcmp.gt.f32.partialorder %v1403_v61, 0.0  ;;  %v1450_v48 = vmul.f32 %v2743_v13, %v1403_v61 }
 0x35d   : > { %v1458_v12 = vsel %vm1419_vm14, %v1371_v60, %v1442_v16  ;;  %v2805_v10 = vsel %vm1427_vm15, %v1403_v61, %v1450_v48 }
 0x35e   : > { %v1475_v8 = vld [vmem:[#allocation2 + $0x30] sm:$0xff]  ;;  %v1476_v6 = vld [vmem:[#allocation2] sm:$0xff]  ;;  %v1477_v7 = vld [vmem:[#allocation2 + $0x58] sm:$0xff] }
 0x35f   : > { %v1491_v17 = vadd.f32 %v1475_v8, %v2761_v25  ;;  %v1492_v9 = vadd.f32 %v1476_v6, %v2777_v41  ;;  %v1493_v11 = vadd.f32 %v1477_v7, %v2751_v2  ;;  %v1478_v4 = vld [vmem:[#allocation2 + $0x18] sm:$0xff]  ;;  %v1479_v5 = vld [vmem:[#allocation2 + $0x50] sm:$0xff]  ;;  %v1480_v14 = vld [vmem:[#allocation2 + $0x68] sm:$0xff] }
 0x360   : > { %v1494_v13 = vadd.f32 %v1478_v4, %v2767_v31  ;;  %v1495_v15 = vadd.f32 %v1479_v5, %v2793_v58  ;;  %v1496_v18 = vadd.f32 %v1480_v14, %v1458_v12  ;;  %v1481_v19 = vld [vmem:[#allocation2 + $0x8] sm:$0xff]  ;;  %v1483_v0 = vld [vmem:[#allocation2 + $0x40] sm:$0xff]  ;;  %v1485_v24 = vld [vmem:[#allocation2 + $0x10] sm:$0xff] }
 0x361   : > { %v1482_v20 = vld [vmem:[#allocation2 + $0x48] sm:$0xff]  ;;  %1507 = vst [vmem:[#allocation2 + $0x30] sm:$0xff] %v1491_v17  ;;  %1508 = vst [vmem:[#allocation2] sm:$0xff] %v1492_v9  ;;  %v1497_v1 = vadd.f32 %v1481_v19, %v2783_v47  ;;  %v1499_v22 = vadd.f32 %v1483_v0, %v2763_v26  ;;  %v1484_v23 = vld [vmem:[#allocation2 + $0x20] sm:$0xff]  ;;  %v1501_v29 = vadd.f32 %v1485_v24, %v2753_v3 }
 0x362   : > { %1509 = vst [vmem:[#allocation2 + $0x58] sm:$0xff] %v1493_v11  ;;  %v1498_v21 = vadd.f32 %v1482_v20, %v2799_v62  ;;  %v1486_v27 = vld [vmem:[#allocation2 + $0x38] sm:$0xff]  ;;  %1510 = vst [vmem:[#allocation2 + $0x18] sm:$0xff] %v1494_v13  ;;  %v1500_v28 = vadd.f32 %v1484_v23, %v2779_v42  ;;  %v1487_v33 = vld [vmem:[#allocation2 + $0x60] sm:$0xff] }
 0x363   : > { %1511 = vst [vmem:[#allocation2 + $0x50] sm:$0xff] %v1495_v15  ;;  %1512 = vst [vmem:[#allocation2 + $0x68] sm:$0xff] %v1496_v18  ;;  %v1502_v30 = vadd.f32 %v1486_v27, %v2769_v32  ;;  %v1488_v34 = vld [vmem:[#allocation2 + $0x70] sm:$0xff]  ;;  %v1489_v35 = vld [vmem:[#allocation2 + $0x78] sm:$0xff]  ;;  %v1503_v36 = vadd.f32 %v1487_v33, %v2795_v59 }
 0x364   : > { %1513 = vst [vmem:[#allocation2 + $0x8] sm:$0xff] %v1497_v1  ;;  %1514 = vst [vmem:[#allocation2 + $0x48] sm:$0xff] %v1498_v21  ;;  %v1504_v37 = vadd.f32 %v1488_v34, %v2805_v10  ;;  %v1505_v38 = vadd.f32 %v1489_v35, %v2785_v49  ;;  %v1490_v39 = vld [vmem:[#allocation2 + $0x28] sm:$0xff] }
 0x365   : > { %1515 = vst [vmem:[#allocation2 + $0x40] sm:$0xff] %v1499_v22  ;;  %1516 = vst [vmem:[#allocation2 + $0x20] sm:$0xff] %v1500_v28  ;;  %v1506_v40 = vadd.f32 %v1490_v39, %v2801_v63 }
 0x366   : > { %1517 = vst [vmem:[#allocation2 + $0x10] sm:$0xff] %v1501_v29  ;;  %1518 = vst [vmem:[#allocation2 + $0x38] sm:$0xff] %v1502_v30 }
 0x367   : > { %1519 = vst [vmem:[#allocation2 + $0x60] sm:$0xff] %v1503_v36  ;;  %1520 = vst [vmem:[#allocation2 + $0x70] sm:$0xff] %v1504_v37 }
 0x368   : > { %1521 = vst [vmem:[#allocation2 + $0x78] sm:$0xff] %v1505_v38  ;;  %1522 = vst [vmem:[#allocation2 + $0x28] sm:$0xff] %v1506_v40 }
 0x369 PF: > { %1523 = vst [vmem:[#allocation11] sm:$0xff] %v2761_v25  ;;  %1524 = vst [vmem:[#allocation11 + $0x8] sm:$0xff] %v2777_v41  ;;  %p2155_p5 = scmp.eq.s32.totalorder %s2529_s30, 2  ;;  %s2457_s27 = smov [#allocation11]  }
 0x36a   : > { %1525 = vst [vmem:[#allocation11 + $0x10] sm:$0xff] %v2751_v2  ;;  %1526 = vst [vmem:[#allocation11 + $0x18] sm:$0xff] %v2767_v31  ;;  %s1548_s12 = sshll.u32 %s2457_s27, 4  ;;  %s1549_s12 = int_to_ptr.vmem [resolvable:$true] %s1548_s12 }
 0x36b   : > { %1527 = vst [vmem:[#allocation11 + $0x20] sm:$0xff] %v2793_v58  ;;  %1528 = vst [vmem:[#allocation11 + $0x28] sm:$0xff] %v1458_v12  ;;  %s2359_s18 = scalar_lea.vmem %s1549_s12, 2048  ;;  %p2366_p1 = scmp.lt.s32.totalorder %s1549_s12, %s1549_s12 }
 0x36c   : > { %1529 = vst [vmem:[#allocation11 + $0x30] sm:$0xff] %v2783_v47  ;;  %1530 = vst [vmem:[#allocation11 + $0x38] sm:$0xff] %v2799_v62  ;;  %p2360_p3 = scmp.ne.s32.totalorder %s1549_s12, %s2359_s18  ;;  %p2367_p13 = scmp.lt.s32.totalorder %s2359_s18, %s2359_s18 }
 0x36d   : > { %1531 = vst [vmem:[#allocation11 + $0x40] sm:$0xff] %v2763_v26  ;;  %1532 = vst [vmem:[#allocation11 + $0x48] sm:$0xff] %v2779_v42 }
 0x36e   : > { %1533 = vst [vmem:[#allocation11 + $0x50] sm:$0xff] %v2753_v3  ;;  %1534 = vst [vmem:[#allocation11 + $0x58] sm:$0xff] %v2769_v32  ;;  %p2361_p11 = pnand %p2360_p3, %p2155_p5  ;;  %p2368_p2 = por %p2367_p13, %p2366_p1 }
 0x36f   : > { %1535 = vst [vmem:[#allocation11 + $0x60] sm:$0xff] %v2795_v59  ;;  %1536 = vst [vmem:[#allocation11 + $0x68] sm:$0xff] %v2805_v10 }
 0x370   : > { %1537 = vst [vmem:[#allocation11 + $0x70] sm:$0xff] %v2785_v49  ;;  %1538 = vst [vmem:[#allocation11 + $0x78] sm:$0xff] %v2801_v63  ;;  %p2362_p0 = pneg %p2361_p11 }
 0x372   : > { %p2369_p10 = pnand %p2368_p2, %p2362_p0 }
 0x374   : > { %2372 = shalt.err (!%p2369_p10)
}
 0x375   : > { %s2458_s21 = smov 128   ;;  %s2459_s1 = smov 8  }
 0x376   : > { %2131 = dma.vmem_to_hbm [thread:$0]  (%p2155_p5), %s1549_s12, 2048, %s2875_s7, [#allocation6], %s2458_s21, %s2458_s21, %s2459_s1  }
 0x377   : > { %2424 = dma.done.wait (%p2155_p5), [#allocation6], 2048  }
 0x378   : > { %2426 = vsyncadd (%p2155_p5), [#allocation6], 4294965248 }
 0x379 PF: > { %s20_s29 = sadd.s32 1, %s2449_s29   ;;  %s2897_s24 = smov %s2433_s25 }
 0x37a   : > { %p17_p8 = scmp.ge.s32.totalorder %s20_s29, 5   ;;  %s2898_s25 = smov %s2437_s26 }
 0x37b   : > { %s2899_s26 = smov %s2609_s22  ;;  %s2900_s27 = smov %s2445_s28 }
 0x37c   : > { %s2901_s28 = smov %s2903_s19  ;;  %19 = sbr.rel (!%p17_p8) target bundleno = 9 (0x9), region = 118 }
 0x381   :  { %1564 = vsyncpa [#allocation5], 1 }
 0x382   :  { %1566 = vsyncpa [#allocation5 + $0x1], 1 }
 0x383   :  { %1567 = vsyncpa [#allocation8], 1 }
 0x384   :  { %1568 = vsyncpa [#allocation6], 1 }
 0x385   :  { %1570 = vsyncpa [#allocation6 + $0x1], 1 }

</bundles_post_ra>
